<compile_context>
chip_gen: v6e
topology: v6e:2x2x1
jax: 0.10.0
libtpu: 0.0.40
codegen_flags: <defaults>
</compile_context>

<pallas_src>
import math

import jax
import jax.numpy as jnp
from jax.experimental import pallas as pl
from jax.experimental.pallas import tpu as pltpu


def _build_pe_table(d_model: int, max_len: int = 50) -> jnp.ndarray:
    """Sinusoidal positional-encoding table, shape (max_len, d_model).

    Matches the PyTorch module (which only supports even d_model).
    """
    if d_model % 2 != 0:
        raise ValueError("PositionalEncoding requires an even d_model "
                         "(same restriction as the PyTorch module).")
    position = jnp.arange(0, max_len, dtype=jnp.float32)[:, None]          # (max_len, 1)
    div_term = jnp.exp(
        jnp.arange(0, d_model, 2, dtype=jnp.float32) * (-math.log(10000.0) / d_model)
    )                                                                       # (d_model//2,)
    pe = jnp.zeros((max_len, d_model), dtype=jnp.float32)
    pe = pe.at[:, 0::2].set(jnp.sin(position * div_term))
    pe = pe.at[:, 1::2].set(jnp.cos(position * div_term))
    return pe


def _pos_enc_kernel(x_ref, pe_ref, o_ref):
    # x_ref/o_ref: (tb, tc); pe_ref: (1, tc) — broadcasts along the sublane
    # axis, dtypes already match.  One vadd per vreg; purely mem-bound.
    o_ref[...] = x_ref[...] + pe_ref[...]


def _round_up(v: int, m: int) -> int:
    return -(-v // m) * m


def _device_budget():
    """Returns (per-block byte budget, device has two TensorCores)."""
    try:
        kind = jax.devices()[0].device_kind.lower()
    except Exception:  # pragma: no cover - defensive (interpret mode / no TPU)
        return 2 << 20, False
    two_tc = "v7" in kind
    if "v5" in kind:
        # v5e: 16 MiB default scoped VMEM -> keep double-buffered in+out <= ~8 MiB.
        return 2 << 20, False
    # v6e / v7x: 32 MiB default scoped VMEM -> ~4 MiB blocks (16 MiB + pe) are safe,
    # and stay well inside v7x's 64 MiB physical VMEM.
    return 4 << 20, two_tc


def _select_tiles(B: int, C: int, itemsize: int, block_bytes: int,
                  sub: int, two_tc: bool):
    """Pick (tb, tc) block shape for the flattened (B, C) add."""
    row_bytes = C * itemsize
    min_rows = B if B <= sub else sub
    if min_rows * row_bytes <= block_bytes:
        # Preferred path: full-C row bands (contiguous HBM DMAs, constant pe index).
        tc = C
        max_rows = block_bytes // row_bytes
        tb = B if B <= max_rows else max(sub, (max_rows // sub) * sub)
        nb = pl.cdiv(B, tb)
        if two_tc:
            # Balance row blocks across v7x's two TensorCores.
            if nb == 1 and B > 2 * sub:
                nb = 2
            elif nb % 2 == 1 and 1 < nb <= 8:
                nb += 1
        if nb > 1:
            tb = min(B, _round_up(pl.cdiv(B, nb), sub))
        return tb, tc
    # Fallback for extremely long rows: thin row band, split the columns.
    tb = B if B <= sub else sub
    tc = min(C, max(128, ((block_bytes // (tb * itemsize)) // 128) * 128))
    return tb, tc


# Below ~1M elements the pallas_call fixed cost (+~0.35 us/step) beats the
# actual HBM traffic; a fused XLA add is strictly faster there.
_PALLAS_MIN_ELEMS = 1 << 20


def positional_encoding(x: jnp.ndarray, pe_table: jnp.ndarray,
                        *, force_pallas: bool = False) -> jnp.ndarray:
    """x: (B, S, D); pe_table: (max_len, D). Returns x + pe[:S] broadcast over batch."""
    B, S, D = x.shape
    max_len = pe_table.shape[0]
    if S > max_len:
        raise ValueError(f"seq_len {S} exceeds positional-encoding max_len {max_len}")

    pe = pe_table[:S].astype(x.dtype)                      # (S, D)

    if not force_pallas and x.size < _PALLAS_MIN_ELEMS:
        # Tiny inputs: plain fused XLA add wins.
        return x + pe[None]

    # Lane-dense 2-D view: last dim is S*D (large multiple of 128 for typical D).
    C = S * D
    x2 = x.reshape(B, C)
    pe2 = pe.reshape(1, C)

    itemsize = x.dtype.itemsize
    sub = {4: 8, 2: 16, 1: 32}.get(itemsize, 8)            # sublane tile per dtype width
    block_bytes, two_tc = _device_budget()
    tb, tc = _select_tiles(B, C, itemsize, block_bytes, sub, two_tc)
    grid = (pl.cdiv(B, tb), pl.cdiv(C, tc))

    out2 = pl.pallas_call(
        _pos_enc_kernel,
        out_shape=jax.ShapeDtypeStruct((B, C), x.dtype),
        grid_spec=pltpu.PrefetchScalarGridSpec(
            num_scalar_prefetch=0,
            grid=grid,
            in_specs=[
                pl.BlockSpec((tb, tc), lambda i, j: (i, j)),   # x tile
                pl.BlockSpec((1, tc), lambda i, j: (0, j)),    # pe tile (constant when tc == C)
            ],
            out_specs=pl.BlockSpec((tb, tc), lambda i, j: (i, j)),
        ),
        compiler_params=pltpu.CompilerParams(
            dimension_semantics=("parallel", "parallel"),
        ),
        input_output_aliases={0: 0},                           # write output into x's buffer
        cost_estimate=pl.CostEstimate(
            flops=B * C,
            bytes_accessed=(2 * B * C + C) * itemsize,
            transcendentals=0,
        ),
    )(x2, pe2)

    return out2.reshape(B, S, D)


if __name__ == "__main__":
    key = jax.random.PRNGKey(0)

    # Small shapes consistent with the module: batch=2, seq=8, d_model=32, max_len=50.
    B, S, D, MAX_LEN = 2, 8, 32, 50
    pe_table = _build_pe_table(D, MAX_LEN)

    x = jax.random.normal(key, (B, S, D), dtype=jnp.float32)
    out = jax.block_until_ready(positional_encoding(x, pe_table, force_pallas=True))
    ref = x + pe_table[None, :S, :]
    assert out.shape == (B, S, D)
    assert jnp.allclose(out, ref, atol=1e-6, rtol=1e-6)

    # Larger shape exercising the tiled (multi-row-block) path and TC rebalance.
    B2, S2 = 300, 40
    x2 = jax.random.normal(jax.random.PRNGKey(1), (B2, S2, D), dtype=jnp.float32)
    out2 = jax.block_until_ready(positional_encoding(x2, pe_table, force_pallas=True))
    ref2 = x2 + pe_table[None, :S2, :]
    assert jnp.allclose(out2, ref2, atol=1e-6, rtol=1e-6)

    # Default path for small inputs (fused XLA add fallback).
    out3 = jax.block_until_ready(positional_encoding(x, pe_table))
    assert jnp.allclose(out3, ref, atol=1e-6, rtol=1e-6)

    # bf16 path (pe cast to x.dtype inside the wrapper).
    xb = x.astype(jnp.bfloat16)
    outb = jax.block_until_ready(positional_encoding(xb, pe_table, force_pallas=True))
    refb = xb + pe_table[None, :S, :].astype(jnp.bfloat16)
    assert jnp.allclose(outb.astype(jnp.float32), refb.astype(jnp.float32),
                        atol=1e-2, rtol=1e-2)

    print("KERNEL_OK")
</pallas_src>

<mosaic_0001>
module attributes {stable_mosaic.version = 11 : i64} {
  func.func @_pos_enc_kernel(%arg0: i32, %arg1: i32, %arg2: memref<2x256xf32, #tpu.memory_space<vmem>>, %arg3: memref<1x256xf32, #tpu.memory_space<vmem>>, %arg4: memref<2x256xf32, #tpu.memory_space<vmem>>) attributes {dimension_semantics = [#tpu.dimension_semantics<parallel>, #tpu.dimension_semantics<parallel>], iteration_bounds = array<i64: 1, 1>, scalar_prefetch = 0 : i64, scratch_operands = 0 : i64, tpu.core_type = #tpu.core_type<tc>, window_params = [{transform_indices = @transform_0, window_bounds = array<i64: 2, 256>}, {transform_indices = @transform_1, window_bounds = array<i64: 1, 256>}, {transform_indices = @transform_2, window_bounds = array<i64: 2, 256>}]} {
    %c0 = arith.constant 0 : index
    %c0_0 = arith.constant 0 : index
    %0 = vector.load %arg2[%c0, %c0_0] : memref<2x256xf32, #tpu.memory_space<vmem>>, vector<2x256xf32>
    %c0_1 = arith.constant 0 : index
    %c0_2 = arith.constant 0 : index
    %1 = vector.load %arg3[%c0_1, %c0_2] : memref<1x256xf32, #tpu.memory_space<vmem>>, vector<1x256xf32>
    %2 = vector.broadcast %1 : vector<1x256xf32> to vector<2x256xf32>
    %3 = arith.addf %0, %2 : vector<2x256xf32>
    %c0_3 = arith.constant 0 : index
    %c0_4 = arith.constant 0 : index
    %4 = vector.load %arg4[%c0_3, %c0_4] : memref<2x256xf32, #tpu.memory_space<vmem>>, vector<2x256xf32>
    tpu.vector_store %arg4[%c0_3, %c0_4], %3 {strides = array<i32>} : memref<2x256xf32, #tpu.memory_space<vmem>>, vector<2x256xf32>,
    return
  }
  func.func @transform_0(%arg0: i32, %arg1: i32) -> (i32, i32) {
    %c0_i32 = arith.constant 0 : i32
    return %arg0, %arg1 : i32, i32
  }
  func.func @transform_1(%arg0: i32, %arg1: i32) -> (i32, i32) {
    %c0_i32 = arith.constant 0 : i32
    %c0_i32_0 = arith.constant 0 : i32
    return %c0_i32, %arg1 : i32, i32
  }
  func.func @transform_2(%arg0: i32, %arg1: i32) -> (i32, i32) {
    %c0_i32 = arith.constant 0 : i32
    return %arg0, %arg1 : i32, i32
  }
}

</mosaic_0001>

<bundles_post_ra>
// kernel: tpu_custom_call.1
= control target key start
LH: loop header
LB: loop body
LE: loop exit
PB: predicated region body
PF: predicated region fallthrough
CT: control target
= control target key end

     0   :  { %7 = vsyncpa [#allocation3], 0  ;;  %s135_s0 = inlined_call_operand.hbm [shape: f32[2,256], index: 0, kind: input, shape index: {}, may-alias: {0,2}]   ;;  %s136_s1 = inlined_call_operand.vmem [shape: f32[1,256], index: 1, kind: input, shape index: {}]   ;;  %s137_s2 = inlined_call_operand.hbm [shape: f32[2,256], index: 2, kind: output, shape index: {}, may-alias: {0,2}]  }
   0x1   :  { %8 = vsyncpa [#allocation4], 0  ;;  %s108_s9 = smov [#allocation2]  }
   0x2   :  { %s15_s10 = sshll.u32 %s108_s9, 4  ;;  %s16_s10 = int_to_ptr.vmem [resolvable:$true] %s15_s10 }
   0x3   :  { %s72_s11 = scalar_lea.vmem %s16_s10, 64  ;;  %p77_p1 = scmp.lt.s32.totalorder %s16_s10, %s16_s10 }
   0x4   :  { %p73_p0 = scmp.ne.s32.totalorder %s16_s10, %s72_s11  ;;  %p78_p2 = scmp.lt.s32.totalorder %s72_s11, %s72_s11 }
   0x6   :  { %p79_p3 = por %p78_p2, %p77_p1 }
   0x8   :  { %p80_p4 = pnand %p79_p3, %p73_p0 }
   0xa   :  { %83 = shalt.err (!%p80_p4)
}
   0xb   :  { %18 = dma.hbm_to_vmem [thread:$0]  %s135_s0, 64, %s16_s10, [#allocation3]  }
   0xc   :  { %104 = dma.done.wait [#allocation3], 64  }
   0xd   :  { %105 = vsyncadd [#allocation3], 4294967232  ;;  %v27_v0 = vlaneseq  ;;  %v109_v1 = vmov 1983009808   ;;  %v25_v7 = vld [vmem:[%s136_s1] sm:$0x3] }
   0xe   :  { %v37_v2 = vunpack.c.l.s4 %v109_v1  ;;  %v24_v12 = vld [vmem:[#allocation2] sm:$0xf]  ;;  %s110_s16 = smov [#allocation5]  }
   0xf   :  { %v28_v3 = vshrl.u32 %v27_v0, 7  ;;  %s52_s0 = sshll.u32 %s110_s16, 4  ;;  %s53_s0 = int_to_ptr.vmem [resolvable:$true] %s52_s0 }
  0x10   :  { %v38_v6 = vunpack.c.0.s8 %v37_v2  ;;  %s84_s17 = scalar_lea.vmem %s53_s0, 64  ;;  %p89_p6 = scmp.lt.s32.totalorder %s53_s0, %s53_s0 }
  0x11   :  { %v29_v4 = vsub.s32 0, %v28_v3  ;;  %v33_v5 = vsub.s32 1, %v28_v3  ;;  %p85_p5 = scmp.ne.s32.totalorder %s53_s0, %s84_s17  ;;  %p90_p7 = scmp.lt.s32.totalorder %s84_s17, %s84_s17 }
  0x12   :  { %v41_v10 = vsub.s32 %v38_v6, %v28_v3 }
  0x13   :  { %v30_v8 = vrot.slane %v25_v7, %v29_v4  ;;  %v34_v9 = vrot.slane %v25_v7, %v33_v5  ;;  %p91_p8 = por %p90_p7, %p89_p6 }
  0x15   :  { %v35_v11 = vcombine.low %v30_v8, %v34_v9  ;;  %p92_p9 = pnand %p91_p8, %p85_p5 }
  0x17   :  { %v42_v13 = vrot.slane %v35_v11, %v41_v10 }
  0x19   :  { %v44_v14 = vadd.f32 %v42_v13, %v24_v12 }
  0x1b   :  { %45 = vst [vmem:[#allocation5] sm:$0xf] %v44_v14 }
  0x1c   :  { %95 = shalt.err (!%p92_p9)
}
  0x1d   :  { %55 = dma.vmem_to_hbm [thread:$0]  %s53_s0, 64, %s137_s2, [#allocation4]  }
  0x1e   :  { %106 = dma.done.wait [#allocation4], 64  }
  0x1f   :  { %107 = vsyncadd [#allocation4], 4294967232 }
  0x20   :  { %59 = vsyncpa [#allocation3], 1 }
  0x21   :  { %60 = vsyncpa [#allocation4], 1 }

</bundles_post_ra>
